<compile_context>
chip_gen: v5e
topology: v5e:2x2
jax: 0.10.0
libtpu: 0.0.40
codegen_flags: <defaults>
</compile_context>

<pallas_src>
import math

import jax
import jax.numpy as jnp
from jax.experimental import pallas as pl
from jax.experimental.pallas import tpu as pltpu


def _filter_kernel(xr_ref, xi_ref, w_ref, or_ref, oi_ref):
    a = xr_ref[...]
    b = xi_ref[...]
    w = w_ref[...]                 # (4, Dl): rows = w1.re, w1.im, w2.re, w2.im
    c = w[0:1, :]                  # broadcast over rows
    d = w[1:2, :]
    e = w[2:3, :]
    f = w[3:4, :]

    # x * weight_1 (complex multiply), then complex_relu
    yr = jnp.maximum(a * c - b * d, 0.0)
    yi = jnp.maximum(a * d + b * c, 0.0)

    # (relu result) * weight_2
    or_ref[...] = yr * e - yi * f
    oi_ref[...] = yr * f + yi * e


def _cdiv(a, b):
    return -(-a // b)


def _round_up(x, m):
    return ((x + m - 1) // m) * m


def _vmem_capacity_bytes():
    # Generation-aware VMEM capacity; conservative fallback (v7x = 64 MiB).
    try:
        info = pltpu.get_tpu_info()
        cap = getattr(info, "vmem_capacity_bytes", None)
        if cap:
            return int(cap)
    except Exception:
        pass
    return 64 * 1024 * 1024


def learnable_filter_layer(x_re, x_im, w1, w2):
    """x_re / x_im: (B, S, D) float32.  w1 / w2: (D, 2) float32 (real, imag)."""
    B, S, D = x_re.shape
    M = B * S
    LANE = 128

    # ---- lane folding: make the last (lane) dim a multiple of 128 ----------
    fold = LANE // math.gcd(D, LANE)      # smallest f with (D*f) % 128 == 0
    Dl = D * fold
    Mf = _cdiv(M, fold)                   # folded row count

    # ---- tile sizing: generation-aware VMEM budget --------------------------
    # Per-step VMEM: 4 big streams (x_re, x_im, out_re, out_im) double-buffered
    # => ~8 * tm * Dl * 4 bytes; weights are negligible.
    vmem_cap = _vmem_capacity_bytes()
    vmem_budget = int(vmem_cap * 0.45)
    tm_max = vmem_budget // (8 * Dl * 4)
    tm_max = max(8, (tm_max // 8) * 8)

    # Pick the grid count first, then tm -> padding is at most ~8*grid_n rows.
    grid_n = _cdiv(Mf, tm_max)
    # Keep >=2 (even) balanced steps when there is meaningful work so both
    # v7x TensorCores stay busy under dimension_semantics=("parallel",).
    if Mf >= 1024:
        grid_n = max(grid_n, 2)
        if grid_n % 2:
            grid_n += 1
    tm = max(8, _round_up(_cdiv(Mf, grid_n), 8))
    Mf_pad = tm * grid_n                  # >= Mf, padding <= 8*grid_n rows
    Mp = Mf_pad * fold                    # padded flat row count
    grid = (grid_n,)

    def prep(x):
        x = x.reshape(M, D)
        if Mp > M:                        # tiny residual pad only (often none)
            x = jnp.pad(x, ((0, Mp - M), (0, 0)))
        return x.reshape(Mf_pad, Dl)

    xr = prep(x_re)
    xi = prep(x_im)

    # Pack all four weight vectors into one resident (4, Dl) array; the weight
    # pattern repeats every D lanes, matching the folded layout.
    w_rows = jnp.stack([w1[:, 0], w1[:, 1], w2[:, 0], w2[:, 1]], axis=0)  # (4,D)
    w_packed = jnp.tile(w_rows, (1, fold))                                 # (4,Dl)

    row_spec = pl.BlockSpec((tm, Dl), lambda i: (i, 0))
    w_spec = pl.BlockSpec((4, Dl), lambda i: (0, 0))   # constant -> resident

    # Explicit scoped-VMEM limit covering all double-buffered streams
    # (v5e default is only 16 MiB; v6e/v7x defaults are 32 MiB).
    vmem_limit = int(min(vmem_cap * 0.7, 8 * tm * Dl * 4 + (4 << 20)))

    n_elem = Mf_pad * Dl
    out_re, out_im = pl.pallas_call(
        _filter_kernel,
        out_shape=(jax.ShapeDtypeStruct((Mf_pad, Dl), jnp.float32),
                   jax.ShapeDtypeStruct((Mf_pad, Dl), jnp.float32)),
        grid_spec=pl.GridSpec(
            grid=grid,
            in_specs=[row_spec, row_spec, w_spec],
            out_specs=[row_spec, row_spec],
        ),
        compiler_params=pltpu.CompilerParams(
            dimension_semantics=("parallel",),
            vmem_limit_bytes=vmem_limit,
        ),
        cost_estimate=pl.CostEstimate(
            flops=14 * n_elem,
            transcendentals=0,
            bytes_accessed=16 * n_elem + 16 * Dl,
        ),
    )(xr, xi, w_packed)

    if Mp > M:
        out_re = out_re.reshape(Mp, D)[:M]
        out_im = out_im.reshape(Mp, D)[:M]
    out_re = out_re.reshape(B, S, D)
    out_im = out_im.reshape(B, S, D)
    return out_re, out_im


def _reference(x_re, x_im, w1, w2):
    # Pure-JAX complex reference matching the PyTorch module semantics.
    x = x_re + 1j * x_im
    weight_1 = (w1[:, 0] + 1j * w1[:, 1]).astype(jnp.complex64)
    weight_2 = (w2[:, 0] + 1j * w2[:, 1]).astype(jnp.complex64)
    xw = x * weight_1
    xw = jnp.maximum(xw.real, 0.0) + 1j * jnp.maximum(xw.imag, 0.0)
    xw = xw * weight_2
    return xw.real, xw.imag


if __name__ == "__main__":
    D = 32
    key = jax.random.PRNGKey(0)
    kw1, kw2, *kxs = jax.random.split(key, 8)

    # Deterministic parameter init: trunc_normal_(std=0.02)
    w1 = jax.random.truncated_normal(kw1, -2.0, 2.0, (D, 2), jnp.float32) * 0.02
    w2 = jax.random.truncated_normal(kw2, -2.0, 2.0, (D, 2), jnp.float32) * 0.02

    def run_case(B, S, kr, ki):
        x_re = jax.random.normal(kr, (B, S, D), jnp.float32)
        x_im = jax.random.normal(ki, (B, S, D), jnp.float32)
        out_re, out_im = learnable_filter_layer(x_re, x_im, w1, w2)
        jax.block_until_ready((out_re, out_im))
        ref_re, ref_im = _reference(x_re, x_im, w1, w2)
        assert jnp.allclose(out_re, ref_re, atol=1e-6), "real part mismatch"
        assert jnp.allclose(out_im, ref_im, atol=1e-6), "imag part mismatch"

    # Small primary case (single-step grid, residual fold padding path).
    run_case(2, 8, kxs[0], kxs[1])
    # Rows not divisible by the lane-fold factor (exercises fold padding).
    run_case(3, 7, kxs[2], kxs[3])
    # Larger case: exercises the multi-step (even) grid with zero padding.
    run_case(16, 640, kxs[4], kxs[5])

    print("KERNEL_OK")
</pallas_src>

<mosaic_0001>
module attributes {stable_mosaic.version = 11 : i64} {
  func.func @_filter_kernel(%arg0: i32, %arg1: memref<8x128xf32, #tpu.memory_space<vmem>>, %arg2: memref<8x128xf32, #tpu.memory_space<vmem>>, %arg3: memref<4x128xf32, #tpu.memory_space<vmem>>, %arg4: memref<8x128xf32, #tpu.memory_space<vmem>>, %arg5: memref<8x128xf32, #tpu.memory_space<vmem>>) attributes {dimension_semantics = [#tpu.dimension_semantics<parallel>], iteration_bounds = array<i64: 1>, scalar_prefetch = 0 : i64, scratch_operands = 0 : i64, tpu.core_type = #tpu.core_type<tc>, window_params = [{transform_indices = @transform_0, window_bounds = array<i64: 8, 128>}, {transform_indices = @transform_1, window_bounds = array<i64: 8, 128>}, {pipeline_mode = #tpu.pipeline_mode<synchronous>, transform_indices = @transform_2, window_bounds = array<i64: 4, 128>}, {transform_indices = @transform_3, window_bounds = array<i64: 8, 128>}, {transform_indices = @transform_4, window_bounds = array<i64: 8, 128>}]} {
    %c0 = arith.constant 0 : index
    %c0_0 = arith.constant 0 : index
    %0 = vector.load %arg1[%c0, %c0_0] : memref<8x128xf32, #tpu.memory_space<vmem>>, vector<8x128xf32>
    %c0_1 = arith.constant 0 : index
    %c0_2 = arith.constant 0 : index
    %1 = vector.load %arg2[%c0_1, %c0_2] : memref<8x128xf32, #tpu.memory_space<vmem>>, vector<8x128xf32>
    %c0_3 = arith.constant 0 : index
    %c0_4 = arith.constant 0 : index
    %2 = vector.load %arg3[%c0_3, %c0_4] : memref<4x128xf32, #tpu.memory_space<vmem>>, vector<4x128xf32>
    %3 = vector.extract_strided_slice %2 {offsets = [0, 0], sizes = [1, 128], strides = [1, 1]} : vector<4x128xf32> to vector<1x128xf32>
    %4 = vector.extract_strided_slice %2 {offsets = [1, 0], sizes = [1, 128], strides = [1, 1]} : vector<4x128xf32> to vector<1x128xf32>
    %5 = vector.extract_strided_slice %2 {offsets = [2, 0], sizes = [1, 128], strides = [1, 1]} : vector<4x128xf32> to vector<1x128xf32>
    %6 = vector.extract_strided_slice %2 {offsets = [3, 0], sizes = [1, 128], strides = [1, 1]} : vector<4x128xf32> to vector<1x128xf32>
    %7 = vector.broadcast %3 : vector<1x128xf32> to vector<8x128xf32>
    %8 = arith.mulf %0, %7 : vector<8x128xf32>
    %9 = vector.broadcast %4 : vector<1x128xf32> to vector<8x128xf32>
    %10 = arith.mulf %1, %9 : vector<8x128xf32>
    %11 = arith.subf %8, %10 : vector<8x128xf32>
    %cst = arith.constant 0.000000e+00 : f32
    %12 = vector.broadcast %cst : f32 to vector<8x128xf32>
    %13 = arith.maximumf %11, %12 : vector<8x128xf32>
    %14 = vector.broadcast %4 : vector<1x128xf32> to vector<8x128xf32>
    %15 = arith.mulf %0, %14 : vector<8x128xf32>
    %16 = vector.broadcast %3 : vector<1x128xf32> to vector<8x128xf32>
    %17 = arith.mulf %1, %16 : vector<8x128xf32>
    %18 = arith.addf %15, %17 : vector<8x128xf32>
    %cst_5 = arith.constant 0.000000e+00 : f32
    %19 = vector.broadcast %cst_5 : f32 to vector<8x128xf32>
    %20 = arith.maximumf %18, %19 : vector<8x128xf32>
    %21 = vector.broadcast %5 : vector<1x128xf32> to vector<8x128xf32>
    %22 = arith.mulf %13, %21 : vector<8x128xf32>
    %23 = vector.broadcast %6 : vector<1x128xf32> to vector<8x128xf32>
    %24 = arith.mulf %20, %23 : vector<8x128xf32>
    %25 = arith.subf %22, %24 : vector<8x128xf32>
    %c0_6 = arith.constant 0 : index
    %c0_7 = arith.constant 0 : index
    %26 = vector.load %arg4[%c0_6, %c0_7] : memref<8x128xf32, #tpu.memory_space<vmem>>, vector<8x128xf32>
    tpu.vector_store %arg4[%c0_6, %c0_7], %25 {strides = array<i32>} : memref<8x128xf32, #tpu.memory_space<vmem>>, vector<8x128xf32>,
    %27 = vector.broadcast %6 : vector<1x128xf32> to vector<8x128xf32>
    %28 = arith.mulf %13, %27 : vector<8x128xf32>
    %29 = vector.broadcast %5 : vector<1x128xf32> to vector<8x128xf32>
    %30 = arith.mulf %20, %29 : vector<8x128xf32>
    %31 = arith.addf %28, %30 : vector<8x128xf32>
    %c0_8 = arith.constant 0 : index
    %c0_9 = arith.constant 0 : index
    %32 = vector.load %arg5[%c0_8, %c0_9] : memref<8x128xf32, #tpu.memory_space<vmem>>, vector<8x128xf32>
    tpu.vector_store %arg5[%c0_8, %c0_9], %31 {strides = array<i32>} : memref<8x128xf32, #tpu.memory_space<vmem>>, vector<8x128xf32>,
    return
  }
  func.func @transform_0(%arg0: i32) -> (i32, i32) {
    %c0_i32 = arith.constant 0 : i32
    %c0_i32_0 = arith.constant 0 : i32
    return %arg0, %c0_i32 : i32, i32
  }
  func.func @transform_1(%arg0: i32) -> (i32, i32) {
    %c0_i32 = arith.constant 0 : i32
    %c0_i32_0 = arith.constant 0 : i32
    return %arg0, %c0_i32 : i32, i32
  }
  func.func @transform_2(%arg0: i32) -> (i32, i32) {
    %c0_i32 = arith.constant 0 : i32
    %c0_i32_0 = arith.constant 0 : i32
    %c0_i32_1 = arith.constant 0 : i32
    return %c0_i32, %c0_i32_0 : i32, i32
  }
  func.func @transform_3(%arg0: i32) -> (i32, i32) {
    %c0_i32 = arith.constant 0 : i32
    %c0_i32_0 = arith.constant 0 : i32
    return %arg0, %c0_i32 : i32, i32
  }
  func.func @transform_4(%arg0: i32) -> (i32, i32) {
    %c0_i32 = arith.constant 0 : i32
    %c0_i32_0 = arith.constant 0 : i32
    return %arg0, %c0_i32 : i32, i32
  }
}

</mosaic_0001>

<bundles_post_ra>
// kernel: tpu_custom_call.1
= control target key start
LH: loop header
LB: loop body
LE: loop exit
PB: predicated region body
PF: predicated region fallthrough
CT: control target
= control target key end

     0   :  { %10 = vsyncpa [#allocation3], 0  ;;  %s294_s0 = inlined_call_operand.hbm [shape: f32[8,128], index: 0, kind: input, shape index: {}]   ;;  %s295_s1 = inlined_call_operand.hbm [shape: f32[8,128], index: 1, kind: input, shape index: {}]   ;;  %s296_s2 = inlined_call_operand.hbm [shape: f32[4,128], index: 2, kind: input, shape index: {}]   ;;  %s297_s3 = inlined_call_operand.hbm [shape: f32[8,128], index: 3, kind: output, shape index: {0}]   ;;  %s298_s4 = inlined_call_operand.hbm [shape: f32[8,128], index: 4, kind: output, shape index: {1}]  }
   0x1   :  { %11 = vsyncpa [#allocation6], 0 }
   0x2   :  { %12 = vsyncpa [#allocation4], 0  ;;  %s30_s17 = sshll.u32 %s295_s1, 4  ;;  %s31_s17 = int_to_ptr.hbm [resolvable:$true] %s30_s17 }
   0x3   :  { %13 = vsyncpa [#allocation10], 0  ;;  %s249_s18 = smov [#allocation5]   ;;  %s19_s22 = sshll.u32 %s294_s0, 4  ;;  %s20_s22 = int_to_ptr.hbm [resolvable:$true] %s19_s22 }
   0x4   :  { %s32_s19 = sshll.u32 %s249_s18, 4  ;;  %s250_s23 = smov [#allocation2]   ;;  %s33_s19 = int_to_ptr.vmem [resolvable:$true] %s32_s19 }
   0x5   :  { %35 = dma.hbm_to_vmem [thread:$0]  %s31_s17, 128, %s33_s19, [#allocation6]  }
   0x6   :  { %s21_s24 = sshll.u32 %s250_s23, 4  ;;  %s41_s27 = sshll.u32 %s296_s2, 4  ;;  %s22_s24 = int_to_ptr.vmem [resolvable:$true] %s21_s24  ;;  %s42_s27 = int_to_ptr.hbm [resolvable:$true] %s41_s27 }
   0x7   :  { %24 = dma.hbm_to_vmem [thread:$0]  %s20_s22, 128, %s22_s24, [#allocation3]  }
   0x8   :  { %s251_s1 = smov [#allocation7]  }
   0x9   :  { %s43_s28 = sshll.u32 %s251_s1, 4  ;;  %s44_s28 = int_to_ptr.vmem [resolvable:$true] %s43_s28 }
   0xa   :  { %46 = dma.hbm_to_vmem [thread:$0]  %s42_s27, 64, %s44_s28, [#allocation6]  }
   0xb   :  { %241 = dma.done.wait [#allocation3], 128  }
   0xc   :  { %242 = vsyncadd [#allocation3], 4294967168 }
   0xd   :  { %243 = dma.done.wait [#allocation6], 192  }
   0xe   :  { %244 = vsyncadd [#allocation6], 4294967104  ;;  %v59_v0 = vld [vmem:[#allocation2] sm:$0xff]  ;;  %v60_v1 = vld [vmem:[#allocation5] sm:$0xff]  ;;  %s252_s0 = smov [#allocation8]   ;;  %s89_s5 = sshll.u32 %s297_s3, 4  ;;  %s90_s5 = int_to_ptr.hbm [resolvable:$true] %s89_s5 }
   0xf   :  { %v61_v2 = vld [vmem:[#allocation7] sm:$0xf]  ;;  %s87_s2 = sshll.u32 %s252_s0, 4  ;;  %s253_s6 = smov [#allocation9]   ;;  %s88_s2 = int_to_ptr.vmem [resolvable:$true] %s87_s2 }
  0x10   :  { %v62_v3 = vperm.slane %v61_v2, 0  ;;  %v64_v4 = vperm.slane %v61_v2, 1  ;;  %v72_v11 = vperm.slane %v61_v2, 2  ;;  %v74_v12 = vperm.slane %v61_v2, 3  ;;  %s98_s7 = sshll.u32 %s253_s6, 4  ;;  %s100_s10 = sshll.u32 %s298_s4, 4  ;;  %s99_s7 = int_to_ptr.vmem [resolvable:$true] %s98_s7  ;;  %s101_s10 = int_to_ptr.hbm [resolvable:$true] %s100_s10 }
  0x12   :  { %v63_v5 = vmul.f32 %v62_v3, %v59_v0  ;;  %v65_v6 = vmul.f32 %v64_v4, %v60_v1  ;;  %v68_v7 = vmul.f32 %v64_v4, %v59_v0  ;;  %v69_v8 = vmul.f32 %v62_v3, %v60_v1 }
  0x14   :  { %v66_v9 = vsub.f32 %v63_v5, %v65_v6  ;;  %v70_v10 = vadd.f32 %v69_v8, %v68_v7 }
  0x16   :  { %v67_v13 = vmax.f32 %v66_v9, 0.0  ;;  %v71_v14 = vmax.f32 %v70_v10, 0.0 }
  0x18   :  { %v73_v15 = vmul.f32 %v72_v11, %v67_v13  ;;  %v75_v16 = vmul.f32 %v74_v12, %v71_v14  ;;  %v78_v17 = vmul.f32 %v74_v12, %v67_v13  ;;  %v79_v18 = vmul.f32 %v72_v11, %v71_v14 }
  0x1a   :  { %v76_v19 = vsub.f32 %v73_v15, %v75_v16  ;;  %v80_v20 = vadd.f32 %v79_v18, %v78_v17 }
  0x1c   :  { %77 = vst [vmem:[#allocation8] sm:$0xff] %v76_v19 }
  0x1d   :  { %81 = vst [vmem:[#allocation9] sm:$0xff] %v80_v20  ;;  %92 = dma.vmem_to_hbm [thread:$0]  %s88_s2, 128, %s90_s5, [#allocation4]  }
  0x1e   :  { %103 = dma.vmem_to_hbm [thread:$0]  %s99_s7, 128, %s101_s10, [#allocation10]  }
  0x1f   :  { %245 = dma.done.wait [#allocation4], 128  }
  0x20   :  { %246 = vsyncadd [#allocation4], 4294967168 }
  0x21   :  { %247 = dma.done.wait [#allocation10], 128  }
  0x22   :  { %248 = vsyncadd [#allocation10], 4294967168 }
  0x23   :  { %112 = vsyncpa [#allocation3], 1 }
  0x24   :  { %113 = vsyncpa [#allocation6], 1 }
  0x25   :  { %114 = vsyncpa [#allocation4], 1 }
  0x26   :  { %115 = vsyncpa [#allocation10], 1 }

</bundles_post_ra>
